<compile_context>
chip_gen: v7x
topology: tpu7x:2x2x1
jax: 0.10.0
libtpu: 0.0.40
codegen_flags: <defaults>
</compile_context>

<pallas_src>
import math

import jax
import jax.numpy as jnp
import numpy as np
from jax.experimental import pallas as pl
from jax.experimental.pallas import tpu as pltpu

# ---- small config consistent with the module (one attention layer) ----
B = 2            # batch size
S = 16           # sequence length
D = 128          # model_dim
HD = 64          # head_dim
NQ = 2           # num query heads
NK = 1           # num key/value heads (GQA)
GROUPS = NQ // NK
QKV = (NQ + 2 * NK) * HD
EPS = 1e-6
ROPE_FREQ = 10000.0
NEG_INF = -1e30
SCALE = 1.0 / math.sqrt(HD)

assert NK == 1, "kernel assumes a single KV head (stacked-GQA score matmul)"


# --------------------------- Pallas kernel ---------------------------------
def mha_kernel(
    x_ref,        # (B*S, D)          f32
    wqkv_ref,     # (D, QKV)          bf16  (q heads | k | v column blocks)
    wout_ref,     # (NQ*HD, D)        bf16
    qknw_ref,     # (2, HD)           f32   row0 = q_norm_w * SCALE, row1 = k_norm_w
    cossin_ref,   # (B*S, 2*HD)       f32   lanes [cos | sin]
    bias_ref,     # (NQ*B*S, B*S)     f32   block-diagonal causal additive bias
    o_ref,        # (B*S, D)          f32
):
    bs = B * S
    xb = x_ref[...].astype(jnp.bfloat16)                                   # [BS, D]

    # One fused projection matmul (bf16 operands, f32 accumulate).
    qkv = jnp.dot(xb, wqkv_ref[...], preferred_element_type=jnp.float32)   # [BS, 256]
    q_all = qkv[:, : NQ * HD]                                              # [BS, NQ*HD]
    k = qkv[:, NQ * HD:(NQ + NK) * HD]                                     # [BS, HD]
    v = qkv[:, (NQ + NK) * HD:]                                            # [BS, HD]

    cos = cossin_ref[:, :HD]
    sin = cossin_ref[:, HD:]
    qnw = qknw_ref[0:1, :]     # attention scale already folded in on the host
    knw = qknw_ref[1:2, :]

    def rms(t, w):             # per-head RMSNorm over the last HD dims
        var = jnp.mean(t * t, axis=-1, keepdims=True)
        return t * jax.lax.rsqrt(var + EPS) * w

    def rope(t):               # rotate_half via slices + lane concat
        t1 = t[:, : HD // 2]
        t2 = t[:, HD // 2:]
        rot = jnp.concatenate([-t2, t1], axis=-1)
        return t * cos + rot * sin

    # Q/K norm (before RoPE, as in the module) + RoPE.
    k = rope(rms(k, knw))                                                  # [BS, HD]
    # Head-major Q slab: rows = (head, batch, q_pos)  -> [NQ*BS, HD]
    q_slab = jnp.concatenate(
        [rope(rms(q_all[:, h * HD:(h + 1) * HD], qnw)) for h in range(NQ)],
        axis=0)

    k16 = k.astype(jnp.bfloat16)
    v16 = v.astype(jnp.bfloat16)

    # Single score matmul for all heads and all batches (GQA: K/V shared).
    s = jax.lax.dot_general(
        q_slab.astype(jnp.bfloat16), k16,
        (((1,), (1,)), ((), ())),                                          # q @ k^T
        preferred_element_type=jnp.float32)                                # [NQ*BS, BS]
    s = s + bias_ref[...]                                                  # causal + cross-batch mask

    m = jnp.max(s, axis=-1, keepdims=True)
    p = jnp.exp(s - m)
    l = jnp.sum(p, axis=-1, keepdims=True)
    p = p * pl.reciprocal(l, approx=True)

    pv = jnp.dot(p.astype(jnp.bfloat16), v16,
                 preferred_element_type=jnp.float32)                       # [NQ*BS, HD]

    # Lane-concatenate head outputs -> [BS, NQ*HD], one fused out_proj matmul.
    attn_out = jnp.concatenate(
        [pv[h * bs:(h + 1) * bs, :] for h in range(NQ)], axis=-1)          # [BS, NQ*HD]
    o_ref[...] = jnp.dot(attn_out.astype(jnp.bfloat16), wout_ref[...],
                         preferred_element_type=jnp.float32)               # [BS, D]


# --------------------------- host-side one-time prep ------------------------
def prepare_kernel_inputs(params, cos, sin):
    """Everything that does not depend on x: done once, not per call."""
    wqkv = params["wqkv_t"].astype(jnp.bfloat16)                           # [D, QKV]
    wout = params["wout_t"].astype(jnp.bfloat16)                           # [NQ*HD, D]
    # Fold attention scale into the Q norm weight (commutes through rms+rope).
    qknw = jnp.concatenate([params["q_norm_w"] * SCALE,
                            params["k_norm_w"]], axis=0)                   # [2, HD]
    cossin = jnp.concatenate([jnp.tile(cos, (B, 1)),
                              jnp.tile(sin, (B, 1))], axis=-1)             # [BS, 2*HD]

    # Block-diagonal causal additive bias.
    # rows = (head, batch, q_pos); cols = (batch, k_pos)
    rows_b = np.tile(np.repeat(np.arange(B), S), NQ)                       # [NQ*B*S]
    rows_s = np.tile(np.arange(S), NQ * B)
    cols_b = np.repeat(np.arange(B), S)                                    # [B*S]
    cols_s = np.tile(np.arange(S), B)
    ok = (rows_b[:, None] == cols_b[None, :]) & (cols_s[None, :] <= rows_s[:, None])
    bias = jnp.asarray(np.where(ok, 0.0, NEG_INF), dtype=jnp.float32)      # [NQ*BS, BS]

    return dict(wqkv=wqkv, wout=wout, qknw=qknw, cossin=cossin, bias=bias)


# --------------------------- wrapper ---------------------------------------
def mha_causal_attention(x, prepped):
    bs = B * S
    x2 = x.reshape(bs, D)
    args = (x2, prepped["wqkv"], prepped["wout"], prepped["qknw"],
            prepped["cossin"], prepped["bias"])

    in_specs = [pl.BlockSpec(a.shape, lambda i: (0, 0)) for a in args]     # all 2-D, full blocks

    out2 = pl.pallas_call(
        mha_kernel,
        out_shape=jax.ShapeDtypeStruct((bs, D), jnp.float32),
        grid_spec=pltpu.PrefetchScalarGridSpec(
            num_scalar_prefetch=0,
            grid=(1,),                                   # whole (tiny) problem in one step
            in_specs=in_specs,
            out_specs=pl.BlockSpec((bs, D), lambda i: (0, 0)),
        ),
        compiler_params=pltpu.CompilerParams(dimension_semantics=("arbitrary",)),
    )(*args)
    return out2.reshape(B, S, D)


# --------------------------- pure-JAX reference -----------------------------
def ref_forward(x, p, cos, sin):
    hi = jax.lax.Precision.HIGHEST

    qkv = jnp.einsum("bsd,de->bse", x, p["wqkv_t"], precision=hi)          # [B, S, QKV]
    qkv = qkv.reshape(B, S, NQ + 2 * NK, HD).transpose(0, 2, 1, 3)
    q, k, v = qkv[:, :NQ], qkv[:, NQ:NQ + NK], qkv[:, NQ + NK:]

    def rms(t, w):
        return t * jax.lax.rsqrt(jnp.mean(t * t, -1, keepdims=True) + EPS) * w

    q = rms(q, p["q_norm_w"][0])
    k = rms(k, p["k_norm_w"][0])

    def rope(t):
        t1, t2 = t[..., : HD // 2], t[..., HD // 2:]
        return t * cos + jnp.concatenate([-t2, t1], axis=-1) * sin

    q, k = rope(q), rope(k)
    k = jnp.repeat(k, GROUPS, axis=1)
    v = jnp.repeat(v, GROUPS, axis=1)
    s = jnp.einsum("bhqd,bhkd->bhqk", q, k, precision=hi) * SCALE
    mask = jnp.tril(jnp.ones((S, S), dtype=bool))
    s = jnp.where(mask, s, -jnp.inf)
    pw = jax.nn.softmax(s, axis=-1)
    o = jnp.einsum("bhqk,bhkd->bhqd", pw, v, precision=hi)
    o = o.transpose(0, 2, 1, 3).reshape(B, S, NQ * HD)
    return jnp.einsum("bsf,fd->bsd", o, p["wout_t"], precision=hi)


# --------------------------- main -------------------------------------------
if __name__ == "__main__":
    key = jax.random.PRNGKey(0)
    ks = jax.random.split(key, 8)

    x = jax.random.normal(ks[0], (B, S, D), dtype=jnp.float32)

    # Single qkv_proj weight (stored transposed: [in, out]) with lane order
    # [q_head0 | q_head1 | k | v], plus out_proj and Q/K RMSNorm weights.
    params = {
        "wqkv_t": 0.02 * jax.random.normal(ks[1], (D, QKV), dtype=jnp.float32),
        "wout_t": 0.02 * jax.random.normal(ks[2], (NQ * HD, D), dtype=jnp.float32),
        "q_norm_w": 1.0 + 0.1 * jax.random.normal(ks[3], (1, HD), dtype=jnp.float32),
        "k_norm_w": 1.0 + 0.1 * jax.random.normal(ks[4], (1, HD), dtype=jnp.float32),
    }

    # RoPE tables (non-interleaved, rotate_half style).
    pos = jnp.arange(S, dtype=jnp.float32)
    inv_freq = 1.0 / (ROPE_FREQ ** (jnp.arange(0, HD, 2, dtype=jnp.float32) / HD))
    theta = jnp.einsum("i,j->ij", pos, inv_freq)            # [S, HD/2]
    emb = jnp.concatenate([theta, theta], axis=-1)          # [S, HD]
    cos = jnp.cos(emb).astype(jnp.float32)
    sin = jnp.sin(emb).astype(jnp.float32)

    # TODO(synk): use_kv_cache=True path (past key/value concat + returning
    # caches) is host-side control flow and is not modeled in this kernel.
    prepped = prepare_kernel_inputs(params, cos, sin)       # one-time prep
    out = jax.block_until_ready(mha_causal_attention(x, prepped))
    ref = jax.block_until_ready(ref_forward(x, params, cos, sin))

    assert out.shape == (B, S, D)
    # bf16 MXU operands + approx reciprocal => slightly looser tolerance.
    np.testing.assert_allclose(np.asarray(out), np.asarray(ref), rtol=3e-2, atol=5e-3)

    print("KERNEL_OK")
</pallas_src>

<mosaic_0001>
module attributes {stable_mosaic.version = 11 : i64} {
  func.func @mha_kernel(%arg0: i32, %arg1: memref<32x128xf32, #tpu.memory_space<vmem>>, %arg2: memref<128x256xbf16, #tpu.memory_space<vmem>>, %arg3: memref<128x128xbf16, #tpu.memory_space<vmem>>, %arg4: memref<2x64xf32, #tpu.memory_space<vmem>>, %arg5: memref<32x128xf32, #tpu.memory_space<vmem>>, %arg6: memref<64x32xf32, #tpu.memory_space<vmem>>, %arg7: memref<32x128xf32, #tpu.memory_space<vmem>>) attributes {dimension_semantics = [#tpu.dimension_semantics<arbitrary>], iteration_bounds = array<i64: 1>, scalar_prefetch = 0 : i64, scratch_operands = 0 : i64, tpu.core_type = #tpu.core_type<tc>, window_params = [{pipeline_mode = #tpu.pipeline_mode<synchronous>, transform_indices = @transform_0, window_bounds = array<i64: 32, 128>}, {pipeline_mode = #tpu.pipeline_mode<synchronous>, transform_indices = @transform_1, window_bounds = array<i64: 128, 256>}, {pipeline_mode = #tpu.pipeline_mode<synchronous>, transform_indices = @transform_2, window_bounds = array<i64: 128, 128>}, {pipeline_mode = #tpu.pipeline_mode<synchronous>, transform_indices = @transform_3, window_bounds = array<i64: 2, 64>}, {pipeline_mode = #tpu.pipeline_mode<synchronous>, transform_indices = @transform_4, window_bounds = array<i64: 32, 128>}, {pipeline_mode = #tpu.pipeline_mode<synchronous>, transform_indices = @transform_5, window_bounds = array<i64: 64, 32>}, {pipeline_mode = #tpu.pipeline_mode<synchronous>, transform_indices = @transform_6, window_bounds = array<i64: 32, 128>}]} {
    %c0 = arith.constant 0 : index
    %c0_0 = arith.constant 0 : index
    %0 = vector.load %arg1[%c0, %c0_0] : memref<32x128xf32, #tpu.memory_space<vmem>>, vector<32x128xf32>
    %1 = arith.truncf %0 : vector<32x128xf32> to vector<32x128xbf16>
    %c0_1 = arith.constant 0 : index
    %c0_2 = arith.constant 0 : index
    %2 = vector.load %arg2[%c0_1, %c0_2] : memref<128x256xbf16, #tpu.memory_space<vmem>>, vector<128x256xbf16>
    %cst = arith.constant dense<0.000000e+00> : vector<32x256xf32>
    %3 = tpu.matmul %1, %2, %cst {dimension_numbers = #tpu.dot_dimension_numbers<[1], [0], [0], [1], [0, 0, 1, 1], [], []>} : vector<32x128xbf16>, vector<128x256xbf16>, vector<32x256xf32> -> vector<32x256xf32>
    %4 = vector.extract_strided_slice %3 {offsets = [0, 0], sizes = [32, 128], strides = [1, 1]} : vector<32x256xf32> to vector<32x128xf32>
    %5 = vector.extract_strided_slice %3 {offsets = [0, 128], sizes = [32, 64], strides = [1, 1]} : vector<32x256xf32> to vector<32x64xf32>
    %6 = vector.extract_strided_slice %3 {offsets = [0, 192], sizes = [32, 64], strides = [1, 1]} : vector<32x256xf32> to vector<32x64xf32>
    %c0_3 = arith.constant 0 : index
    %c0_4 = arith.constant 0 : index
    %7 = vector.load %arg5[%c0_3, %c0_4] : memref<32x128xf32, #tpu.memory_space<vmem>>, vector<32x64xf32>
    %c0_5 = arith.constant 0 : index
    %c64 = arith.constant 64 : index
    %8 = vector.load %arg5[%c0_5, %c64] : memref<32x128xf32, #tpu.memory_space<vmem>>, vector<32x64xf32>
    %c0_6 = arith.constant 0 : index
    %c0_7 = arith.constant 0 : index
    %9 = vector.load %arg4[%c0_6, %c0_7] : memref<2x64xf32, #tpu.memory_space<vmem>>, vector<1x64xf32>
    %c1 = arith.constant 1 : index
    %c0_8 = arith.constant 0 : index
    %10 = vector.load %arg4[%c1, %c0_8] : memref<2x64xf32, #tpu.memory_space<vmem>>, vector<1x64xf32>
    %11 = arith.mulf %5, %5 : vector<32x64xf32>
    %cst_9 = arith.constant dense<0.000000e+00> : vector<32xf32>
    %12 = vector.multi_reduction <add>, %11, %cst_9 [1] : vector<32x64xf32> to vector<32xf32>
    %13 = vector.shape_cast %12 : vector<32xf32> to vector<32x1xf32>
    %cst_10 = arith.constant 6.400000e+01 : f32
    %14 = vector.broadcast %cst_10 : f32 to vector<32x1xf32>
    %15 = arith.divf %13, %14 : vector<32x1xf32>
    %cst_11 = arith.constant 9.99999997E-7 : f32
    %16 = vector.broadcast %cst_11 : f32 to vector<32x1xf32>
    %17 = arith.addf %15, %16 : vector<32x1xf32>
    %18 = math.rsqrt %17 : vector<32x1xf32>
    %19 = vector.broadcast %18 : vector<32x1xf32> to vector<32x64xf32>
    %20 = arith.mulf %5, %19 : vector<32x64xf32>
    %21 = vector.broadcast %10 : vector<1x64xf32> to vector<32x64xf32>
    %22 = arith.mulf %20, %21 : vector<32x64xf32>
    %23 = vector.extract_strided_slice %22 {offsets = [0, 0], sizes = [32, 32], strides = [1, 1]} : vector<32x64xf32> to vector<32x32xf32>
    %24 = vector.extract_strided_slice %22 {offsets = [0, 32], sizes = [32, 32], strides = [1, 1]} : vector<32x64xf32> to vector<32x32xf32>
    %cst_12 = arith.constant 0.000000e+00 : f32
    %25 = vector.broadcast %cst_12 : f32 to vector<32x32xf32>
    %26 = arith.subf %25, %24 : vector<32x32xf32>
    %27 = tpu.concatenate %26, %23 in 1 : vector<32x32xf32>, vector<32x32xf32> -> vector<32x64xf32>
    %28 = arith.mulf %22, %7 : vector<32x64xf32>
    %29 = arith.mulf %27, %8 : vector<32x64xf32>
    %30 = arith.addf %28, %29 : vector<32x64xf32>
    %31 = vector.extract_strided_slice %4 {offsets = [0, 0], sizes = [32, 64], strides = [1, 1]} : vector<32x128xf32> to vector<32x64xf32>
    %32 = arith.mulf %31, %31 : vector<32x64xf32>
    %cst_13 = arith.constant dense<0.000000e+00> : vector<32xf32>
    %33 = vector.multi_reduction <add>, %32, %cst_13 [1] : vector<32x64xf32> to vector<32xf32>
    %34 = vector.shape_cast %33 : vector<32xf32> to vector<32x1xf32>
    %cst_14 = arith.constant 6.400000e+01 : f32
    %35 = vector.broadcast %cst_14 : f32 to vector<32x1xf32>
    %36 = arith.divf %34, %35 : vector<32x1xf32>
    %cst_15 = arith.constant 9.99999997E-7 : f32
    %37 = vector.broadcast %cst_15 : f32 to vector<32x1xf32>
    %38 = arith.addf %36, %37 : vector<32x1xf32>
    %39 = math.rsqrt %38 : vector<32x1xf32>
    %40 = vector.broadcast %39 : vector<32x1xf32> to vector<32x64xf32>
    %41 = arith.mulf %31, %40 : vector<32x64xf32>
    %42 = vector.broadcast %9 : vector<1x64xf32> to vector<32x64xf32>
    %43 = arith.mulf %41, %42 : vector<32x64xf32>
    %44 = vector.extract_strided_slice %43 {offsets = [0, 0], sizes = [32, 32], strides = [1, 1]} : vector<32x64xf32> to vector<32x32xf32>
    %45 = vector.extract_strided_slice %43 {offsets = [0, 32], sizes = [32, 32], strides = [1, 1]} : vector<32x64xf32> to vector<32x32xf32>
    %cst_16 = arith.constant 0.000000e+00 : f32
    %46 = vector.broadcast %cst_16 : f32 to vector<32x32xf32>
    %47 = arith.subf %46, %45 : vector<32x32xf32>
    %48 = tpu.concatenate %47, %44 in 1 : vector<32x32xf32>, vector<32x32xf32> -> vector<32x64xf32>
    %49 = arith.mulf %43, %7 : vector<32x64xf32>
    %50 = arith.mulf %48, %8 : vector<32x64xf32>
    %51 = arith.addf %49, %50 : vector<32x64xf32>
    %52 = vector.extract_strided_slice %4 {offsets = [0, 64], sizes = [32, 64], strides = [1, 1]} : vector<32x128xf32> to vector<32x64xf32>
    %53 = arith.mulf %52, %52 : vector<32x64xf32>
    %cst_17 = arith.constant dense<0.000000e+00> : vector<32xf32>
    %54 = vector.multi_reduction <add>, %53, %cst_17 [1] : vector<32x64xf32> to vector<32xf32>
    %55 = vector.shape_cast %54 : vector<32xf32> to vector<32x1xf32>
    %cst_18 = arith.constant 6.400000e+01 : f32
    %56 = vector.broadcast %cst_18 : f32 to vector<32x1xf32>
    %57 = arith.divf %55, %56 : vector<32x1xf32>
    %cst_19 = arith.constant 9.99999997E-7 : f32
    %58 = vector.broadcast %cst_19 : f32 to vector<32x1xf32>
    %59 = arith.addf %57, %58 : vector<32x1xf32>
    %60 = math.rsqrt %59 : vector<32x1xf32>
    %61 = vector.broadcast %60 : vector<32x1xf32> to vector<32x64xf32>
    %62 = arith.mulf %52, %61 : vector<32x64xf32>
    %63 = vector.broadcast %9 : vector<1x64xf32> to vector<32x64xf32>
    %64 = arith.mulf %62, %63 : vector<32x64xf32>
    %65 = vector.extract_strided_slice %64 {offsets = [0, 0], sizes = [32, 32], strides = [1, 1]} : vector<32x64xf32> to vector<32x32xf32>
    %66 = vector.extract_strided_slice %64 {offsets = [0, 32], sizes = [32, 32], strides = [1, 1]} : vector<32x64xf32> to vector<32x32xf32>
    %cst_20 = arith.constant 0.000000e+00 : f32
    %67 = vector.broadcast %cst_20 : f32 to vector<32x32xf32>
    %68 = arith.subf %67, %66 : vector<32x32xf32>
    %69 = tpu.concatenate %68, %65 in 1 : vector<32x32xf32>, vector<32x32xf32> -> vector<32x64xf32>
    %70 = arith.mulf %64, %7 : vector<32x64xf32>
    %71 = arith.mulf %69, %8 : vector<32x64xf32>
    %72 = arith.addf %70, %71 : vector<32x64xf32>
    %73 = tpu.concatenate %51, %72 in 0 : vector<32x64xf32>, vector<32x64xf32> -> vector<64x64xf32>
    %74 = arith.truncf %30 : vector<32x64xf32> to vector<32x64xbf16>
    %75 = arith.truncf %6 : vector<32x64xf32> to vector<32x64xbf16>
    %76 = arith.truncf %73 : vector<64x64xf32> to vector<64x64xbf16>
    %cst_21 = arith.constant dense<0.000000e+00> : vector<64x32xf32>
    %77 = tpu.matmul %76, %74, %cst_21 {dimension_numbers = #tpu.dot_dimension_numbers<[1], [1], [0], [0], [0, 0, 1, 0], [], []>} : vector<64x64xbf16>, vector<32x64xbf16>, vector<64x32xf32> -> vector<64x32xf32>
    %c0_22 = arith.constant 0 : index
    %c0_23 = arith.constant 0 : index
    %78 = vector.load %arg6[%c0_22, %c0_23] : memref<64x32xf32, #tpu.memory_space<vmem>>, vector<64x32xf32>
    %79 = arith.addf %77, %78 : vector<64x32xf32>
    %cst_24 = arith.constant dense<0xFF800000> : vector<64xf32>
    %80 = vector.multi_reduction <maximumf>, %79, %cst_24 [1] : vector<64x32xf32> to vector<64xf32>
    %81 = vector.shape_cast %80 : vector<64xf32> to vector<64x1xf32>
    %82 = vector.broadcast %81 : vector<64x1xf32> to vector<64x32xf32>
    %83 = arith.subf %79, %82 : vector<64x32xf32>
    %84 = math.exp %83 : vector<64x32xf32>
    %cst_25 = arith.constant dense<0.000000e+00> : vector<64xf32>
    %85 = vector.multi_reduction <add>, %84, %cst_25 [1] : vector<64x32xf32> to vector<64xf32>
    %86 = vector.shape_cast %85 : vector<64xf32> to vector<64x1xf32>
    %87 = tpu.reciprocal %86 {approx = true} : vector<64x1xf32> -> vector<64x1xf32>
    %88 = vector.broadcast %87 : vector<64x1xf32> to vector<64x32xf32>
    %89 = arith.mulf %84, %88 : vector<64x32xf32>
    %90 = arith.truncf %89 : vector<64x32xf32> to vector<64x32xbf16>
    %cst_26 = arith.constant dense<0.000000e+00> : vector<64x64xf32>
    %91 = tpu.matmul %90, %75, %cst_26 {dimension_numbers = #tpu.dot_dimension_numbers<[1], [0], [0], [1], [0, 0, 1, 1], [], []>} : vector<64x32xbf16>, vector<32x64xbf16>, vector<64x64xf32> -> vector<64x64xf32>
    %92 = vector.extract_strided_slice %91 {offsets = [0, 0], sizes = [32, 64], strides = [1, 1]} : vector<64x64xf32> to vector<32x64xf32>
    %93 = vector.extract_strided_slice %91 {offsets = [32, 0], sizes = [32, 64], strides = [1, 1]} : vector<64x64xf32> to vector<32x64xf32>
    %94 = tpu.concatenate %92, %93 in 1 : vector<32x64xf32>, vector<32x64xf32> -> vector<32x128xf32>
    %95 = arith.truncf %94 : vector<32x128xf32> to vector<32x128xbf16>
    %c0_27 = arith.constant 0 : index
    %c0_28 = arith.constant 0 : index
    %96 = vector.load %arg3[%c0_27, %c0_28] : memref<128x128xbf16, #tpu.memory_space<vmem>>, vector<128x128xbf16>
    %cst_29 = arith.constant dense<0.000000e+00> : vector<32x128xf32>
    %97 = tpu.matmul %95, %96, %cst_29 {dimension_numbers = #tpu.dot_dimension_numbers<[1], [0], [0], [1], [0, 0, 1, 1], [], []>} : vector<32x128xbf16>, vector<128x128xbf16>, vector<32x128xf32> -> vector<32x128xf32>
    %c0_30 = arith.constant 0 : index
    %c0_31 = arith.constant 0 : index
    %98 = vector.load %arg7[%c0_30, %c0_31] : memref<32x128xf32, #tpu.memory_space<vmem>>, vector<32x128xf32>
    tpu.vector_store %arg7[%c0_30, %c0_31], %97 {strides = array<i32>} : memref<32x128xf32, #tpu.memory_space<vmem>>, vector<32x128xf32>,
    return
  }
  func.func @transform_0(%arg0: i32) -> (i32, i32) {
    %c0_i32 = arith.constant 0 : i32
    %c0_i32_0 = arith.constant 0 : i32
    %c0_i32_1 = arith.constant 0 : i32
    return %c0_i32, %c0_i32_0 : i32, i32
  }
  func.func @transform_1(%arg0: i32) -> (i32, i32) {
    %c0_i32 = arith.constant 0 : i32
    %c0_i32_0 = arith.constant 0 : i32
    %c0_i32_1 = arith.constant 0 : i32
    return %c0_i32, %c0_i32_0 : i32, i32
  }
  func.func @transform_2(%arg0: i32) -> (i32, i32) {
    %c0_i32 = arith.constant 0 : i32
    %c0_i32_0 = arith.constant 0 : i32
    %c0_i32_1 = arith.constant 0 : i32
    return %c0_i32, %c0_i32_0 : i32, i32
  }
  func.func @transform_3(%arg0: i32) -> (i32, i32) {
    %c0_i32 = arith.constant 0 : i32
    %c0_i32_0 = arith.constant 0 : i32
    %c0_i32_1 = arith.constant 0 : i32
    return %c0_i32, %c0_i32_0 : i32, i32
  }
  func.func @transform_4(%arg0: i32) -> (i32, i32) {
    %c0_i32 = arith.constant 0 : i32
    %c0_i32_0 = arith.constant 0 : i32
    %c0_i32_1 = arith.constant 0 : i32
    return %c0_i32, %c0_i32_0 : i32, i32
  }
  func.func @transform_5(%arg0: i32) -> (i32, i32) {
    %c0_i32 = arith.constant 0 : i32
    %c0_i32_0 = arith.constant 0 : i32
    %c0_i32_1 = arith.constant 0 : i32
    return %c0_i32, %c0_i32_0 : i32, i32
  }
  func.func @transform_6(%arg0: i32) -> (i32, i32) {
    %c0_i32 = arith.constant 0 : i32
    %c0_i32_0 = arith.constant 0 : i32
    %c0_i32_1 = arith.constant 0 : i32
    return %c0_i32, %c0_i32_0 : i32, i32
  }
}

</mosaic_0001>

<bundles_post_ra>
// kernel: tpu_custom_call.1
= control target key start
LH: loop header
LB: loop body
LE: loop exit
PB: predicated region body
PF: predicated region fallthrough
CT: control target
= control target key end

     0   :  { %11 = vsyncpa [#allocation3], 0  ;;  %s1718_s0 = inlined_call_operand.vmem [shape: f32[32,128], index: 0, kind: input, shape index: {}]   ;;  %s1719_s1 = inlined_call_operand.hbm [shape: bf16[128,256], index: 1, kind: input, shape index: {}]   ;;  %s1720_s2 = inlined_call_operand.vmem [shape: bf16[128,128], index: 2, kind: input, shape index: {}]   ;;  %s1721_s3 = inlined_call_operand.vmem [shape: f32[2,64], index: 3, kind: input, shape index: {}]   ;;  %s1722_s4 = inlined_call_operand.hbm [shape: f32[32,128], index: 4, kind: input, shape index: {}]   ;;  %s1723_s5 = inlined_call_operand.vmem [shape: f32[64,32], index: 5, kind: input, shape index: {}]   ;;  %s1724_s6 = inlined_call_operand.hbm [shape: f32[32,128], index: 6, kind: output, shape index: {}]  }
   0x1   :  { %12 = vsyncpa [#allocation6], 0 }
   0x2   :  { %13 = vsyncpa [#allocation4], 0  ;;  %s1277_s21 = smov [#allocation2]   ;;  %s1205_s25 = scalar_lea.hbm %s1719_s1, 2048 }
   0x3   :  { %s21_s22 = sshll.u32 %s1277_s21, 4  ;;  %p1206_p0 = scmp.ne.s32.totalorder %s1719_s1, %s1205_s25  ;;  %s22_s22 = int_to_ptr.vmem [resolvable:$true] %s21_s22 }
   0x4   :  { %p1209_p1 = scmp.lt.u32.totalorder %s1205_s25, %s1719_s1 }
   0x6   :  { %p1211_p2 = pnand %p1209_p1, %p1206_p0 }
   0x8   :  { %1214 = shalt.err (!%p1211_p2)
}
   0x9   :  { %s1215_s30 = scalar_lea.vmem %s22_s22, 2048  ;;  %p1220_p4 = scmp.lt.s32.totalorder %s22_s22, %s22_s22 }
   0xa   :  { %p1216_p3 = scmp.ne.s32.totalorder %s22_s22, %s1215_s30  ;;  %p1221_p5 = scmp.lt.s32.totalorder %s1215_s30, %s1215_s30 }
   0xc   :  { %p1222_p6 = por %p1221_p5, %p1220_p4 }
   0xe   :  { %p1223_p7 = pnand %p1222_p6, %p1216_p3 }
  0x10   :  { %1226 = shalt.err (!%p1223_p7)
}
  0x11   :  { %s1278_s7 = smov 128   ;;  %s1279_s8 = smov 8  }
  0x12   :  { %27 = dma.hbm_to_vmem [thread:$0]  %s1719_s1, 2048, %s22_s22, [#allocation3], %s1278_s7, %s1278_s7, %s1279_s8  }
  0x13   :  { %s1280_s11 = smov [#allocation5]   ;;  %s1227_s15 = scalar_lea.hbm %s1722_s4, 512 }
  0x14   :  { %s37_s12 = sshll.u32 %s1280_s11, 4  ;;  %p1228_p8 = scmp.ne.s32.totalorder %s1722_s4, %s1227_s15  ;;  %s38_s12 = int_to_ptr.vmem [resolvable:$true] %s37_s12 }
  0x15   :  { %p1231_p9 = scmp.lt.u32.totalorder %s1227_s15, %s1722_s4 }
  0x17   :  { %p1233_p10 = pnand %p1231_p9, %p1228_p8 }
  0x19   :  { %1236 = shalt.err (!%p1233_p10)
}
  0x1a   :  { %s1237_s20 = scalar_lea.vmem %s38_s12, 512  ;;  %p1242_p12 = scmp.lt.s32.totalorder %s38_s12, %s38_s12 }
  0x1b   :  { %p1238_p11 = scmp.ne.s32.totalorder %s38_s12, %s1237_s20  ;;  %p1243_p13 = scmp.lt.s32.totalorder %s1237_s20, %s1237_s20 }
  0x1d   :  { %p1244_p0 = por %p1243_p13, %p1242_p12 }
  0x1f   :  { %p1245_p1 = pnand %p1244_p0, %p1238_p11 }
  0x21   :  { %1248 = shalt.err (!%p1245_p1)
}
  0x22   :  { %43 = dma.hbm_to_vmem [thread:$0]  %s1722_s4, 512, %s38_s12, [#allocation6], %s1278_s7, %s1278_s7, %s1279_s8  }
  0x23   :  { %1271 = dma.done.wait [#allocation3], 2048  }
  0x24   :  { %1272 = vsyncadd [#allocation3], 4294965248 }
  0x25   :  { %1273 = dma.done.wait [#allocation6], 512  }
  0x26   :  { %1274 = vsyncadd [#allocation6], 4294966784  ;;  %v1281_v0 = vmov 0   ;;  %v1117_v1 = vld [vmem:[#allocation2 + $0x4] ss:$8 sps:$4 sm:$0xff]   ;;  %v55_v20 = vld [vmem:[%s1718_s0 + $0x10] sm:$0xff] }
  0x27   :  { %187 = vmatprep.mubr.bf16.mxu0 %v1281_v0  ;;  %v1119_v2 = vld [vmem:[#allocation2] ss:$8 sps:$4 sm:$0xff]   ;;  %155 = vmatprep.subr.bf16.mxu0 %v1117_v1  ;;  %v1120_v3 = vld [vmem:[#allocation2 + $0x14] ss:$8 sps:$4 sm:$0xff]   ;;  %v1122_v4 = vld [vmem:[#allocation2 + $0x10] ss:$8 sps:$4 sm:$0xff]  }
  0x28   :  { %156 = vmatpush1.bf16.msra.mxu0 %v1119_v2  ;;  %v1123_v5 = vld [vmem:[#allocation2 + $0x24] ss:$8 sps:$4 sm:$0xff]   ;;  %v1125_v6 = vld [vmem:[#allocation2 + $0x20] ss:$8 sps:$4 sm:$0xff]   ;;  %v1126_v7 = vld [vmem:[#allocation2 + $0x34] ss:$8 sps:$4 sm:$0xff]  }
  0x29   :  { %157 = vmatprep.subr.bf16.mxu0 %v1120_v3  ;;  %v1128_v8 = vld [vmem:[#allocation2 + $0x30] ss:$8 sps:$4 sm:$0xff]   ;;  %v1129_v9 = vld [vmem:[#allocation2 + $0x44] ss:$8 sps:$4 sm:$0xff]   ;;  %v1131_v10 = vld [vmem:[#allocation2 + $0x40] ss:$8 sps:$4 sm:$0xff]  }
  0x2a   :  { %v1132_v11 = vld [vmem:[#allocation2 + $0x54] ss:$8 sps:$4 sm:$0xff]   ;;  %v1134_v12 = vld [vmem:[#allocation2 + $0x50] ss:$8 sps:$4 sm:$0xff]   ;;  %v1135_v13 = vld [vmem:[#allocation2 + $0x64] ss:$8 sps:$4 sm:$0xff]  }
  0x2b   :  { %v1137_v14 = vld [vmem:[#allocation2 + $0x60] ss:$8 sps:$4 sm:$0xff]   ;;  %v1138_v15 = vld [vmem:[#allocation2 + $0x74] ss:$8 sps:$4 sm:$0xff]   ;;  %v1140_v16 = vld [vmem:[#allocation2 + $0x70] ss:$8 sps:$4 sm:$0xff]  }
  0x2c   :  { %158 = vmatpush1.bf16.msra.mxu0 %v1122_v4  ;;  %v53_v17 = vld [vmem:[%s1718_s0] sm:$0xff]  ;;  %v54_v18 = vld [vmem:[%s1718_s0 + $0x8] sm:$0xff]  ;;  %v56_v21 = vld [vmem:[%s1718_s0 + $0x18] sm:$0xff]  ;;  %s1282_s29 = smov 64   ;;  %vm218_vm0 = vcmask 523264   ;;  %s1283_s9 = smov 96  }
  0x2d   :  { %159 = vmatprep.subr.bf16.mxu0 %v1123_v5  ;;  %v57_v19 = vpack.c.bf16 %v54_v18, %v53_v17  ;;  %v58_v22 = vpack.c.bf16 %v56_v21, %v55_v20  ;;  %v1404_v37 = vld [vmem:[%s1721_s3] ss:$0 sm:$0xff]  ;;  %v1418_v43 = vld [vmem:[#allocation5 + $0x8] sm:$0xff]  ;;  %v1426_v52 = vld [vmem:[#allocation5 + $0x10] sm:$0xff]  ;;  %s1284_s10 = smov 32   ;;  %vm292_vm1 = vcmask 261120  }
  0x2e   :  { %v1408_v38 = vld [vmem:[#allocation5] sm:$0xff]  ;;  %v1430_v53 = vld [vmem:[#allocation5 + $0x18] sm:$0xff] }
  0x30   :  { %160 = vmatpush1.bf16.msra.mxu0 %v1125_v6 }
  0x31   :  { %161 = vmatprep.subr.bf16.mxu0 %v1126_v7 }
  0x34   :  { %162 = vmatpush1.bf16.msra.mxu0 %v1128_v8 }
  0x35   :  { %163 = vmatprep.subr.bf16.mxu0 %v1129_v9 }
  0x38   :  { %164 = vmatpush1.bf16.msra.mxu0 %v1131_v10 }
  0x39   :  { %165 = vmatprep.subr.bf16.mxu0 %v1132_v11 }
  0x3c   :  { %166 = vmatpush1.bf16.msra.mxu0 %v1134_v12 }
  0x3d   :  { %167 = vmatprep.subr.bf16.mxu0 %v1135_v13 }
  0x40   :  { %168 = vmatpush1.bf16.msra.mxu0 %v1137_v14 }
  0x41   :  { %169 = vmatprep.subr.bf16.mxu0 %v1138_v15 }
  0x44   :  { %170 = vmatpush1.bf16.msra.mxu0 %v1140_v16 }
  0x47   :  { %188 = vmatmul.mubr.bf16.vlgmr.msra.gmra.mrb[0].mxu0 %v57_v19 }
  0x48   :  { %197 = vmatprep.mubr.bf16.mxu0 %v1281_v0 }
  0x4f   :  { %198 = vmatmul.mubr.bf16.gmra.mrb[4].mxu0 %v58_v22 }
 0x11a   :  { %v1363_v23 = vpop.f32.mrb[0].mxu0 }
 0x11b   :  { %v1365_v24 = vpop.f32.mrb[1].mxu0  ;;  %v325_v25 = vmul.f32 %v1363_v23, %v1363_v23 }
 0x11c   :  { %v1369_v26 = vpop.f32.mrb[2].mxu0  ;;  %v214_v39 = vmul.f32 %v1365_v24, %v1365_v24 }
 0x11d   :  { %421 = vrot.lane.b32.xlu0 %v325_v25, %s1282_s29  ;;  %v1372_v27 = vpop.f32.mrb[3].mxu0  ;;  %v326_v29 = vmul.f32 %v1369_v26, %v1369_v26  ;;  %v329_v1 = vsel %vm218_vm0, %v325_v25, 0.0 }
 0x11e   :  { %v555_v28 = vpack.c.bf16 %v1372_v27, %v1365_v24  ;;  %v219_v40 = vsel %vm218_vm0, %v214_v39, 0.0  ;;  %v215_v41 = vmul.f32 %v1372_v27, %v1372_v27 }
 0x11f   :  { %v332_v57 = vsel %vm218_vm0, %v326_v29, 0.0 }
 0x120   :  { %v222_v42 = vsel %vm218_vm0, %v215_v41, 0.0 }
 0x121   :  { %423 = vrot.lane.b32.xlu0 %v326_v29, %s1282_s29 }
 0x122   :  { %v1379_v30 = vpop.f32.mrb[4].mxu0 }
 0x123   :  { %v1381_v31 = vpop.f32.mrb[5].mxu0  ;;  %v1385_v32 = vmul.f32 %v1379_v30, %v1379_v30 }
 0x124   :  { %v1387_v33 = vpop.f32.mrb[6].mxu0  ;;  %v216_v54 = vmul.f32 %v1381_v31, %v1381_v31 }
 0x125   :  { %425 = vrot.lane.b32.xlu1 %v1385_v32, %s1282_s29  ;;  %v1391_v34 = vpop.f32.mrb[7].mxu0  ;;  %v1397_v36 = vmul.f32 %v1387_v33, %v1387_v33 }
 0x126   :  { %v556_v35 = vpack.c.bf16 %v1391_v34, %v1381_v31  ;;  %v225_v55 = vsel %vm218_vm0, %v216_v54, 0.0  ;;  %v217_v58 = vmul.f32 %v1391_v34, %v1391_v34  ;;  %v335_v54 = vsel %vm218_vm0, %v1385_v32, 0.0 }
 0x128   :  { %v228_v62 = vsel %vm218_vm0, %v217_v58, 0.0 }
 0x129   :  { %427 = vrot.lane.b32.xlu1 %v1397_v36, %s1282_s29 }
 0x12d   :  { %462 = vrot.lane.b32.xlu1 %v1404_v37, %s1282_s29 }
 0x131   :  { %305 = vrot.lane.b32.xlu1 %v1408_v38, %s1282_s29 }
 0x140   :  { %220 = vadd.xlane.f32.xlu0 %v219_v40 }
 0x144   :  { %223 = vadd.xlane.f32.xlu0 %v222_v42 }
 0x15a   :  { %307 = vrot.lane.b32.xlu0 %v1418_v43, %s1282_s29 }
 0x18f   :  { %v422_v44 = vpop.permute.xlu0 %421 }
 0x190   :  { %v433_v45 = vsel %vm218_vm0, %v422_v44, 0.0 }
 0x191   :  { %434 = vadd.xlane.f32.xlu0 %v433_v45 }
 0x193   :  { %v424_v46 = vpop.permute.xlu0 %423 }
 0x194   :  { %v436_v47 = vsel %vm218_vm0, %v424_v46, 0.0 }
 0x195   :  { %437 = vadd.xlane.f32.xlu1 %v436_v47 }
 0x197   :  { %v426_v48 = vpop.permute.xlu1 %425 }
 0x198   :  { %v439_v49 = vsel %vm218_vm0, %v426_v48, 0.0 }
 0x199   :  { %440 = vadd.xlane.f32.xlu0 %v439_v49 }
 0x19b   :  { %v428_v50 = vpop.permute.xlu1 %427 }
 0x19c   :  { %v442_v51 = vsel %vm218_vm0, %v428_v50, 0.0 }
 0x19d   :  { %443 = vadd.xlane.f32.xlu0 %v442_v51 }
 0x19f   :  { %v463_v6 = vpop.permute.xlu1 %462 }
 0x1a3   :  { %v1450_v8 = vpop.permute.xlu1 %305 }
 0x1a6   :  { %309 = vrot.lane.b32.xlu1 %v1426_v52, %s1282_s29 }
 0x1b3   :  { %311 = vrot.lane.b32.xlu0 %v1430_v53, %s1282_s29 }
 0x1ca   :  { %226 = vadd.xlane.f32.xlu1 %v225_v55  ;;  %v338_v55 = vsel %vm218_vm0, %v1397_v36, 0.0 }
 0x1cd   :  { %v221_v56 = vpop.xlane.xlu0 %220 }
 0x1ce   :  { %v232_v59 = vmul.f32 0.015625, %v221_v56  ;;  %333 = vadd.xlane.f32.xlu1 %v332_v57 }
 0x1d0   :  { %v236_v60 = vadd.f32 1e-06, %v232_v59 }
 0x1d1   :  { %v224_v61 = vpop.xlane.xlu0 %223 }
 0x1d2   :  { %1149 = vrsqrt.f32 %v236_v60  ;;  %v233_v63 = vmul.f32 0.015625, %v224_v61  ;;  %229 = vadd.xlane.f32.xlu0 %v228_v62 }
 0x1d4   :  { %v237_v0 = vadd.f32 1e-06, %v233_v63 }
 0x1d5   :  { %v1448_v7 = vpop.permute.xlu0 %307 }
 0x1d6   :  { %1151 = vrsqrt.f32 %v237_v0  ;;  %330 = vadd.xlane.f32.xlu0 %v329_v1 }
 0x1dc   :  { %v1150_v2 = vpop.eup %1149 }
 0x1dd   :  { %v1443_v3 = vmul.f32 %v1150_v2, %v1365_v24 }
 0x1e0   :  { %v1152_v4 = vpop.eup %1151 }
 0x1e1   :  { %v1446_v5 = vmul.f32 %v1152_v4, %v1372_v27 }
 0x21e   :  { %v435_v9 = vpop.xlane.xlu0 %434 }
 0x21f   :  { %v445_v10 = vmul.f32 0.015625, %v435_v9 }
 0x221   :  { %v449_v11 = vadd.f32 1e-06, %v445_v10 }
 0x222   :  { %v438_v12 = vpop.xlane.xlu1 %437 }
 0x223   :  { %1153 = vrsqrt.f32 %v449_v11  ;;  %v446_v13 = vmul.f32 0.015625, %v438_v12 }
 0x225   :  { %v450_v14 = vadd.f32 1e-06, %v446_v13 }
 0x226   :  { %v441_v15 = vpop.xlane.xlu0 %440  ;;  %v1484_v56 = vpop.permute.xlu1 %309 }
 0x227   :  { %1155 = vrsqrt.f32 %v450_v14  ;;  %v447_v16 = vmul.f32 0.015625, %v441_v15 }
 0x229   :  { %v451_v17 = vadd.f32 1e-06, %v447_v16 }
 0x22a   :  { %v444_v18 = vpop.xlane.xlu0 %443 }
 0x22b   :  { %1157 = vrsqrt.f32 %v451_v17  ;;  %v448_v19 = vmul.f32 0.015625, %v444_v18  ;;  %v1002_v18 = vld [vmem:[%s1721_s3 + $0x1] ss:$0 sm:$0xff] }
 0x22d   :  { %v1154_v20 = vpop.eup %1153  ;;  %v452_v21 = vadd.f32 1e-06, %v448_v19 }
 0x22e   :  { %v457_v22 = vmul.f32 %v1154_v20, %v1363_v23  ;;  %v1486_v57 = vpop.permute.xlu0 %311 }
 0x22f   :  { %1159 = vrsqrt.f32 %v452_v21 }
 0x230   :  { %v1453_v25 = vmul.f32 %v463_v6, %v457_v22 }
 0x231   :  { %v1156_v29 = vpop.eup %1155 }
 0x232   :  { %493 = vrot.lane.b32.xlu1 %v1453_v25, %s1283_s9  ;;  %v469_v39 = vsub.f32 0.0, %v1453_v25  ;;  %v458_v40 = vmul.f32 %v1156_v29, %v1369_v26 }
 0x234   :  { %477 = vrot.lane.b32.xlu0 %v469_v39, %s1284_s10  ;;  %v1460_v41 = vmul.f32 %v463_v6, %v458_v40 }
 0x235   :  { %v1158_v42 = vpop.eup %1157 }
 0x236   :  { %495 = vrot.lane.b32.xlu1 %v1460_v41, %s1283_s9  ;;  %v470_v44 = vsub.f32 0.0, %v1460_v41  ;;  %v459_v45 = vmul.f32 %v1158_v42, %v1379_v30  ;;  %v1502_v42 = vmul.f32 %v1002_v18, %v1443_v3 }
 0x238   :  { %v1468_v48 = vmul.f32 %v463_v6, %v459_v45 }
 0x239   :  { %v1160_v46 = vpop.eup %1159 }
 0x23a   :  { %479 = vrot.lane.b32.xlu1 %v470_v44, %s1284_s10  ;;  %v460_v47 = vmul.f32 %v1160_v46, %v1387_v33  ;;  %v471_v50 = vsub.f32 0.0, %v1468_v48  ;;  %v1505_v44 = vmul.f32 %v1002_v18, %v1446_v5  ;;  %v256_v46 = vsub.f32 0.0, %v1502_v42 }
 0x23c   :  { %v1470_v49 = vmul.f32 %v463_v6, %v460_v47  ;;  %v257_v47 = vsub.f32 0.0, %v1505_v44 }
 0x23e   :  { %497 = vrot.lane.b32.xlu1 %v1468_v48, %s1283_s9  ;;  %499 = vrot.lane.b32.xlu0 %v1470_v49, %s1283_s9  ;;  %v472_v51 = vsub.f32 0.0, %v1470_v49 }
 0x242   :  { %481 = vrot.lane.b32.xlu1 %v471_v50, %s1284_s10  ;;  %483 = vrot.lane.b32.xlu0 %v472_v51, %s1284_s10 }
 0x257   :  { %v227_v58 = vpop.xlane.xlu1 %226 }
 0x258   :  { %v234_v62 = vmul.f32 0.015625, %v227_v58 }
 0x25a   :  { %v238_v2 = vadd.f32 1e-06, %v234_v62 }
 0x25b   :  { %v334_v60 = vpop.xlane.xlu1 %333 }
 0x25c   :  { %1161 = vrsqrt.f32 %v238_v2  ;;  %v342_v9 = vmul.f32 0.015625, %v334_v60 }
 0x25e   :  { %v346_v14 = vadd.f32 1e-06, %v342_v9 }
 0x25f   :  { %v230_v59 = vpop.xlane.xlu0 %229 }
 0x260   :  { %v235_v0 = vmul.f32 0.015625, %v230_v59 }
 0x261   :  { %336 = vadd.xlane.f32.xlu0 %v335_v54 }
 0x262   :  { %v239_v6 = vadd.f32 1e-06, %v235_v0 }
 0x263   :  { %v331_v61 = vpop.xlane.xlu0 %330 }
 0x264   :  { %1163 = vrsqrt.f32 %v239_v6  ;;  %v341_v11 = vmul.f32 0.015625, %v331_v61 }
 0x265   :  { %1165 = vrsqrt.f32 %v346_v14 }
 0x266   :  { %339 = vadd.xlane.f32.xlu1 %v338_v55  ;;  %v345_v17 = vadd.f32 1e-06, %v341_v11  ;;  %v1162_v29 = vpop.eup %1161 }
 0x267   :  { %v246_v50 = vmul.f32 %v1162_v29, %v1381_v31 }
 0x268   :  { %1167 = vrsqrt.f32 %v345_v17 }
 0x269   :  { %v1515_v5 = vmul.f32 %v1002_v18, %v246_v50 }
 0x26b   :  { %v258_v58 = vsub.f32 0.0, %v1515_v5 }
 0x26e   :  { %v1164_v45 = vpop.eup %1163 }
 0x26f   :  { %v247_v51 = vmul.f32 %v1164_v45, %v1391_v34  ;;  %v1166_v3 = vpop.eup %1165 }
 0x270   :  { %v354_v61 = vmul.f32 %v1166_v3, %v1369_v26 }
 0x271   :  { %v1517_v54 = vmul.f32 %v1002_v18, %v247_v51 }
 0x272   :  { %v1168_v55 = vpop.eup %1167 }
 0x273   :  { %v259_v59 = vsub.f32 0.0, %v1517_v54  ;;  %v353_v60 = vmul.f32 %v1168_v55, %v1363_v23  ;;  %v298_v55 = vmul.f32 %v1505_v44, %v1418_v43 }
 0x275   :  { %v1530_v62 = vmul.f32 %v1404_v37, %v353_v60 }
 0x277   :  { %v365_v23 = vsub.f32 0.0, %v1530_v62 }
 0x2a4   :  { %v494_v63 = vpop.permute.xlu1 %493 }
 0x2a6   :  { %v478_v1 = vpop.permute.xlu0 %477 }
 0x2a7   :  { %v505_v32 = vsel %vm292_vm1, %v478_v1, %v494_v63  ;;  %v1533_v63 = vmul.f32 %v1404_v37, %v354_v61 }
 0x2a8   :  { %v513_v4 = vmul.f32 %v505_v32, %v1450_v8  ;;  %v496_v36 = vpop.permute.xlu1 %495 }
 0x2a9   :  { %v366_v26 = vsub.f32 0.0, %v1533_v63 }
 0x2aa   :  { %521 = vrot.lane.b32.xlu0 %v513_v4, %s1282_s29 }
 0x2ac   :  { %v480_v10 = vpop.permute.xlu1 %479 }
 0x2ad   :  { %v506_v12 = vsel %vm292_vm1, %v480_v10, %v496_v36 }
 0x2ae   :  { %v514_v13 = vmul.f32 %v506_v12, %v1448_v7 }
 0x2b0   :  { %v498_v15 = vpop.permute.xlu1 %497  ;;  %523 = vrot.lane.b32.xlu1 %v514_v13, %s1282_s29  ;;  %v500_v16 = vpop.permute.xlu0 %499 }
 0x2b4   :  { %v482_v19 = vpop.permute.xlu1 %481  ;;  %v484_v20 = vpop.permute.xlu0 %483 }
 0x2b5   :  { %v507_v21 = vsel %vm292_vm1, %v482_v19, %v498_v15  ;;  %v508_v22 = vsel %vm292_vm1, %v484_v20, %v500_v16  ;;  %v509_v16 = vmul.f32 %v1453_v25, %v1450_v8  ;;  %v511_v20 = vmul.f32 %v1468_v48, %v1484_v56 }
 0x2b6   :  { %v515_v39 = vmul.f32 %v507_v21, %v1484_v56  ;;  %v516_v40 = vmul.f32 %v508_v22, %v1486_v57  ;;  %v512_v21 = vmul.f32 %v1470_v49, %v1486_v57  ;;  %v297_v49 = vmul.f32 %v1502_v42, %v1408_v38 }
 0x2b8   :  { %525 = vrot.lane.b32.xlu1 %v515_v39, %s1282_s29  ;;  %527 = vrot.lane.b32.xlu0 %v516_v40, %s1282_s29 }
 0x2bc   :  { %264 = vrot.lane.b32.xlu1 %v256_v46, %s1283_s9  ;;  %266 = vrot.lane.b32.xlu0 %v257_v47, %s1283_s9 }
 0x2c0   :  { %280 = vrot.lane.b32.xlu1 %v1502_v42, %s1284_s10  ;;  %282 = vrot.lane.b32.xlu0 %v1505_v44, %s1284_s10  ;;  %v299_v42 = vmul.f32 %v1515_v5, %v1426_v52 }
 0x2c4   :  { %268 = vrot.lane.b32.xlu1 %v258_v58, %s1283_s9  ;;  %270 = vrot.lane.b32.xlu0 %v259_v59, %s1283_s9 }
 0x2c8   :  { %284 = vrot.lane.b32.xlu1 %v1515_v5, %s1284_s10  ;;  %286 = vrot.lane.b32.xlu0 %v1517_v54, %s1284_s10 }
 0x2cc   :  { %373 = vrot.lane.b32.xlu1 %v365_v23, %s1283_s9  ;;  %375 = vrot.lane.b32.xlu0 %v366_v26, %s1283_s9 }
 0x2d0   :  { %389 = vrot.lane.b32.xlu1 %v1530_v62, %s1284_s10  ;;  %391 = vrot.lane.b32.xlu0 %v1533_v63, %s1284_s10 }
 0x2ee   :  { %v337_v0 = vpop.xlane.xlu0 %336 }
 0x2ef   :  { %v343_v1 = vmul.f32 0.015625, %v337_v0 }
 0x2f1   :  { %v347_v32 = vadd.f32 1e-06, %v343_v1 }
 0x2f3   :  { %1169 = vrsqrt.f32 %v347_v32  ;;  %v340_v2 = vpop.xlane.xlu1 %339 }
 0x2f4   :  { %v344_v4 = vmul.f32 0.015625, %v340_v2 }
 0x2f6   :  { %v348_v36 = vadd.f32 1e-06, %v344_v4  ;;  %v300_v4 = vmul.f32 %v1517_v54, %v1430_v53 }
 0x2f8   :  { %1171 = vrsqrt.f32 %v348_v36 }
 0x2fd   :  { %v1170_v6 = vpop.eup %1169 }
 0x2fe   :  { %v355_v9 = vmul.f32 %v1170_v6, %v1379_v30 }
 0x300   :  { %v1549_v10 = vmul.f32 %v1404_v37, %v355_v9 }
 0x302   :  { %v1172_v11 = vpop.eup %1171  ;;  %v367_v12 = vsub.f32 0.0, %v1549_v10 }
 0x303   :  { %v356_v13 = vmul.f32 %v1172_v11, %v1387_v33  ;;  %v510_v33 = vmul.f32 %v1460_v41, %v1448_v7 }
 0x304   :  { %377 = vrot.lane.b32.xlu1 %v367_v12, %s1283_s9 }
 0x305   :  { %v1555_v14 = vmul.f32 %v1404_v37, %v356_v13 }
 0x307   :  { %v368_v15 = vsub.f32 0.0, %v1555_v14 }
 0x308   :  { %393 = vrot.lane.b32.xlu1 %v1549_v10, %s1284_s10 }
 0x309   :  { %379 = vrot.lane.b32.xlu0 %v368_v15, %s1283_s9 }
 0x30d   :  { %395 = vrot.lane.b32.xlu0 %v1555_v14, %s1284_s10 }
 0x31c   :  { %v522_v30 = vpop.permute.xlu0 %521 }
 0x31d   :  { %v533_v37 = vadd.f32 %v522_v30, %v509_v16 }
 0x322   :  { %v524_v17 = vpop.permute.xlu1 %523 }
 0x323   :  { %v534_v18 = vadd.f32 %v524_v17, %v510_v33 }
 0x325   :  { %v1097_v19 = vpack.i.bf16 %v534_v18, %v533_v37  ;;  %v405_v37 = vmul.f32 %v1530_v62, %v1408_v38  ;;  %v406_v18 = vmul.f32 %v1533_v63, %v1418_v43  ;;  %v407_v38 = vmul.f32 %v1549_v10, %v1426_v52 }
 0x326   :  { %v408_v43 = vmul.f32 %v1555_v14, %v1430_v53  ;;  %v561_v53 = vld [vmem:[%s1723_s5] sm:$0xff]  ;;  %v564_v14 = vld [vmem:[%s1723_s5 + $0x18] sm:$0xff] }
 0x327   :  { %1098 = vrot.lane.b32.xlu1 %v1097_v19, %s1282_s29 }
 0x32a   :  { %v526_v22 = vpop.permute.xlu1 %525  ;;  %v528_v29 = vpop.permute.xlu0 %527 }
 0x32b   :  { %v535_v39 = vadd.f32 %v526_v22, %v511_v20  ;;  %v536_v40 = vadd.f32 %v528_v29, %v512_v21 }
 0x32d   :  { %v1102_v25 = vpack.i.bf16 %v536_v40, %v535_v39 }
 0x32e   :  { %v265_v45 = vpop.permute.xlu1 %264  ;;  %v267_v46 = vpop.permute.xlu0 %266 }
 0x32f   :  { %1103 = vrot.lane.b32.xlu0 %v1102_v25, %s1282_s29 }
 0x332   :  { %v281_v41 = vpop.permute.xlu1 %280  ;;  %v283_v47 = vpop.permute.xlu0 %282 }
 0x333   :  { %v293_v50 = vsel %vm292_vm1, %v265_v45, %v281_v41  ;;  %v294_v51 = vsel %vm292_vm1, %v267_v46, %v283_v47 }
 0x334   :  { %v317_v48 = vmul.f32 %v1450_v8, %v293_v50  ;;  %v318_v3 = vmul.f32 %v1448_v7, %v294_v51 }
 0x336   :  { %v269_v58 = vpop.permute.xlu1 %268  ;;  %v271_v59 = vpop.permute.xlu0 %270  ;;  %v321_v60 = vadd.f32 %v317_v48, %v297_v49  ;;  %v322_v61 = vadd.f32 %v318_v3, %v298_v55  ;;  %v562_v49 = vld [vmem:[%s1723_s5 + $0x8] sm:$0xff] }
 0x338   :  { %v553_v23 = vpack.c.bf16 %v322_v61, %v321_v60 }
 0x33a   :  { %v285_v26 = vpop.permute.xlu1 %284  ;;  %1086 = vmatprep.subr.msk.bf16.mxu1 %vm218_vm0, %v553_v23  ;;  %v287_v0 = vpop.permute.xlu0 %286  ;;  %v582_v1 = vsel %vm218_vm0, %v553_v23, 0 }
 0x33b   :  { %v295_v32 = vsel %vm292_vm1, %v269_v58, %v285_v26  ;;  %v296_v2 = vsel %vm292_vm1, %v271_v59, %v287_v0  ;;  %1043 = vmatpush3.bf16.xpose.msra.mxu1 %v582_v1  ;;  %v563_v59 = vld [vmem:[%s1723_s5 + $0x10] sm:$0xff] }
 0x33c   :  { %v319_v44 = vmul.f32 %v1484_v56, %v295_v32  ;;  %v320_v36 = vmul.f32 %v1486_v57, %v296_v2 }
 0x33e   :  { %v323_v6 = vadd.f32 %v319_v44, %v299_v42  ;;  %v324_v9 = vadd.f32 %v320_v36, %v300_v4  ;;  %v374_v11 = vpop.permute.xlu1 %373  ;;  %v376_v12 = vpop.permute.xlu0 %375  ;;  %v565_v42 = vld [vmem:[%s1723_s5 + $0x20] sm:$0xff]  ;;  %v567_v4 = vld [vmem:[%s1723_s5 + $0x30] sm:$0xff] }
 0x340   :  { %v554_v13 = vpack.c.bf16 %v324_v9, %v323_v6  ;;  %v566_v6 = vld [vmem:[%s1723_s5 + $0x28] sm:$0xff] }
 0x342   :  { %v390_v15 = vpop.permute.xlu1 %389  ;;  %1087 = vmatprep.subr.msk.bf16.mxu1 %vm218_vm0, %v554_v13  ;;  %v392_v30 = vpop.permute.xlu0 %391  ;;  %v585_v16 = vsel %vm218_vm0, %v554_v13, 0 }
 0x343   :  { %v401_v5 = vsel %vm292_vm1, %v374_v11, %v390_v15  ;;  %v402_v33 = vsel %vm292_vm1, %v376_v12, %v392_v30  ;;  %1045 = vmatpush3.bf16.xpose.msra.mxu1 %v585_v16  ;;  %v568_v12 = vld [vmem:[%s1723_s5 + $0x38] sm:$0xff] }
 0x344   :  { %v409_v54 = vmul.f32 %v401_v5, %v1450_v8  ;;  %v410_v17 = vmul.f32 %v402_v33, %v1448_v7 }
 0x346   :  { %v413_v19 = vadd.f32 %v409_v54, %v405_v37  ;;  %v414_v20 = vadd.f32 %v410_v17, %v406_v18 }
 0x348   :  { %v557_v21 = vpack.c.bf16 %v414_v20, %v413_v19 }
 0x34a   :  { %1046 = vmatprep.mubr.msk.bf16.mxu1 %vm218_vm0, %v557_v21 }
 0x376   :  { %v378_v22 = vpop.permute.xlu1 %377 }
 0x37a   :  { %v394_v29 = vpop.permute.xlu1 %393 }
 0x37b   :  { %v380_v39 = vpop.permute.xlu0 %379  ;;  %v403_v40 = vsel %vm292_vm1, %v378_v22, %v394_v29 }
 0x37c   :  { %v411_v8 = vmul.f32 %v403_v40, %v1484_v56 }
 0x37e   :  { %v415_v63 = vadd.f32 %v411_v8, %v407_v38 }
 0x37f   :  { %v396_v25 = vpop.permute.xlu0 %395 }
 0x380   :  { %v404_v7 = vsel %vm292_vm1, %v380_v39, %v396_v25 }
 0x381   :  { %v412_v62 = vmul.f32 %v404_v7, %v1486_v57 }
 0x383   :  { %v416_v45 = vadd.f32 %v412_v62, %v408_v43 }
 0x385   :  { %v558_v46 = vpack.c.bf16 %v416_v45, %v415_v63 }
 0x387   :  { %1047 = vmatmul.mubr.msk.bf16.vlgmr.msra.gmra.mrb[0].mxu1 %vm218_vm0, %v558_v46 }
 0x399   :  { %v1099_v41 = vpop.permute.xlu1 %1098 }
 0x39a   :  { %v1101_v47 = vunpack.i.h.bf16 %v1099_v41  ;;  %v1100_v50 = vunpack.i.l.bf16 %v1099_v41 }
 0x39c   :  { %v559_v56 = vpack.c.bf16 %v1101_v47, %v1100_v50 }
 0x39e   :  { %1050 = vmatprep.mubr.msk.bf16.mxu1 %vm218_vm0, %v559_v56 }
 0x3a1   :  { %v1104_v51 = vpop.permute.xlu0 %1103 }
 0x3a2   :  { %v1106_v48 = vunpack.i.h.bf16 %v1104_v51  ;;  %v1105_v3 = vunpack.i.l.bf16 %v1104_v51 }
 0x3a4   :  { %v560_v52 = vpack.c.bf16 %v1106_v48, %v1105_v3 }
 0x3a6   :  { %1051 = vmatmul.mubr.msk.bf16.gmra.mrb[4].mxu1 %vm218_vm0, %v560_v52 }
 0x45a   :  { %v1048_v57 = vpop.f32.mrb[0].mxu1 }
 0x45b   :  { %v621_v10 = vpop.f32.mrb[1].mxu1  ;;  %v630_v0 = vadd.f32 %v1048_v57, %v563_v59 }
 0x45c   :  { %v622_v55 = vadd.f32 %v621_v10, %v561_v53  ;;  %v1049_v58 = vpop.f32.mrb[2].mxu1 }
 0x45d   :  { %v624_v60 = vpop.f32.mrb[3].mxu1  ;;  %v633_v61 = vadd.f32 %v1049_v58, %v564_v14  ;;  %v658_v2 = vsel %vm292_vm1, %v630_v0, -inf }
 0x45e   :  { %v625_v23 = vadd.f32 %v624_v60, %v562_v49  ;;  %v652_v26 = vsel %vm292_vm1, %v622_v55, -inf }
 0x45f   :  { %653 = vmax.xlane.f32.xlu1 %v652_v26  ;;  %v661_v32 = vsel %vm292_vm1, %v633_v61, -inf }
 0x460   :  { %v655_v1 = vsel %vm292_vm1, %v625_v23, -inf }
 0x461   :  { %656 = vmax.xlane.f32.xlu0 %v655_v1 }
 0x463   :  { %662 = vmax.xlane.f32.xlu1 %v661_v32 }
 0x465   :  { %659 = vmax.xlane.f32.xlu0 %v658_v2 }
 0x479   :  { %v1052_v44 = vpop.f32.mrb[4].mxu1 }
 0x47a   :  { %v637_v36 = vpop.f32.mrb[5].mxu1  ;;  %v646_v15 = vadd.f32 %v1052_v44, %v567_v4 }
 0x47b   :  { %v638_v9 = vadd.f32 %v637_v36, %v565_v42  ;;  %v1053_v11 = vpop.f32.mrb[6].mxu1 }
 0x47c   :  { %v640_v13 = vpop.f32.mrb[7].mxu1  ;;  %v649_v5 = vadd.f32 %v1053_v11, %v568_v12  ;;  %v670_v54 = vsel %vm292_vm1, %v646_v15, -inf }
 0x47d   :  { %v641_v30 = vadd.f32 %v640_v13, %v566_v6  ;;  %v664_v16 = vsel %vm292_vm1, %v638_v9, -inf }
 0x47e   :  { %665 = vmax.xlane.f32.xlu0 %v664_v16  ;;  %v673_v17 = vsel %vm292_vm1, %v649_v5, -inf }
 0x47f   :  { %v667_v33 = vsel %vm292_vm1, %v641_v30, -inf }
 0x480   :  { %668 = vmax.xlane.f32.xlu1 %v667_v33 }
 0x482   :  { %671 = vmax.xlane.f32.xlu0 %v670_v54 }
 0x484   :  { %674 = vmax.xlane.f32.xlu1 %v673_v17 }
 0x4ec   :  { %v654_v37 = vpop.xlane.xlu1 %653 }
 0x4ed   :  { %v676_v18 = vsub.f32 %v622_v55, %v654_v37 }
 0x4ee   :  { %v657_v19 = vpop.xlane.xlu0 %656 }
 0x4ef   :  { %v684_v20 = vmul.f32 1.442695, %v676_v18  ;;  %v677_v21 = vsub.f32 %v625_v23, %v657_v19 }
 0x4f0   :  { %v663_v22 = vpop.xlane.xlu1 %662 }
 0x4f1   :  { %1173 = vpow2.f32 %v684_v20  ;;  %v686_v29 = vmul.f32 1.442695, %v677_v21  ;;  %v679_v39 = vsub.f32 %v633_v61, %v663_v22 }
 0x4f2   :  { %v660_v40 = vpop.xlane.xlu0 %659 }
 0x4f3   :  { %1175 = vpow2.f32 %v686_v29  ;;  %v690_v8 = vmul.f32 1.442695, %v679_v39  ;;  %v678_v25 = vsub.f32 %v630_v0, %v660_v40  ;;  %v1141_v29 = vld [vmem:[%s1720_s2] sm:$0xff]   ;;  %v1142_v39 = vld [vmem:[%s1720_s2 + $0x8] sm:$0xff]   ;;  %v1143_v40 = vld [vmem:[%s1720_s2 + $0x10] sm:$0xff]  }
 0x4f4   :  { %1066 = vmatprep.subr.bf16.mxu0 %v1141_v29 }
 0x4f5   :  { %1177 = vpow2.f32 %v690_v8  ;;  %v688_v7 = vmul.f32 1.442695, %v678_v25  ;;  %1067 = vmatpush3.bf16.msra.mxu0 %v1141_v29  ;;  %v1144_v8 = vld [vmem:[%s1720_s2 + $0x18] sm:$0xff]   ;;  %v1145_v25 = vld [vmem:[%s1720_s2 + $0x20] sm:$0xff]  }
 0x4f6   :  { %1068 = vmatprep.subr.bf16.mxu0 %v1142_v39 }
 0x4f7   :  { %1179 = vpow2.f32 %v688_v7  ;;  %v1146_v7 = vld [vmem:[%s1720_s2 + $0x28] sm:$0xff]  }
 0x4f9   :  { %1069 = vmatpush3.bf16.msra.mxu0 %v1142_v39 }
 0x4fa   :  { %1070 = vmatprep.subr.bf16.mxu0 %v1143_v40 }
 0x4fb   :  { %v1174_v38 = vpop.eup %1173 }
 0x4fc   :  { %v700_v43 = vsel %vm292_vm1, %v1174_v38, 0.0 }
 0x4fd   :  { %v1176_v62 = vpop.eup %1175  ;;  %701 = vadd.xlane.f32.xlu0 %v700_v43  ;;  %1071 = vmatpush3.bf16.msra.mxu0 %v1143_v40 }
 0x4fe   :  { %v703_v63 = vsel %vm292_vm1, %v1176_v62, 0.0  ;;  %1072 = vmatprep.subr.bf16.mxu0 %v1144_v8 }
 0x4ff   :  { %v1647_v45 = vpop.eup %1177  ;;  %704 = vadd.xlane.f32.xlu1 %v703_v63 }
 0x500   :  { %v709_v41 = vsel %vm292_vm1, %v1647_v45, 0.0 }
 0x501   :  { %v1649_v46 = vpop.eup %1179  ;;  %1073 = vmatpush3.bf16.msra.mxu0 %v1144_v8 }
 0x502   :  { %v706_v47 = vsel %vm292_vm1, %v1649_v46, 0.0  ;;  %1074 = vmatprep.subr.bf16.mxu0 %v1145_v25 }
 0x503   :  { %710 = vadd.xlane.f32.xlu1 %v709_v41  ;;  %707 = vadd.xlane.f32.xlu0 %v706_v47 }
 0x505   :  { %1075 = vmatpush3.bf16.msra.mxu0 %v1145_v25 }
 0x506   :  { %1076 = vmatprep.subr.bf16.mxu0 %v1146_v7 }
 0x509   :  { %1077 = vmatpush3.bf16.msra.mxu0 %v1146_v7 }
 0x50b   :  { %v666_v50 = vpop.xlane.xlu0 %665 }
 0x50c   :  { %v680_v56 = vsub.f32 %v638_v9, %v666_v50 }
 0x50d   :  { %v669_v51 = vpop.xlane.xlu1 %668 }
 0x50e   :  { %v681_v3 = vsub.f32 %v641_v30, %v669_v51  ;;  %v692_v53 = vmul.f32 1.442695, %v680_v56 }
 0x50f   :  { %v672_v48 = vpop.xlane.xlu0 %671 }
 0x510   :  { %v682_v52 = vsub.f32 %v646_v15, %v672_v48  ;;  %v694_v49 = vmul.f32 1.442695, %v681_v3 }
 0x511   :  { %v675_v57 = vpop.xlane.xlu1 %674 }
 0x512   :  { %v696_v10 = vmul.f32 1.442695, %v682_v52  ;;  %v683_v14 = vsub.f32 %v649_v5, %v675_v57 }
 0x514   :  { %1181 = vpow2.f32 %v696_v10  ;;  %v698_v55 = vmul.f32 1.442695, %v683_v14 }
 0x515   :  { %1183 = vpow2.f32 %v692_v53 }
 0x516   :  { %1185 = vpow2.f32 %v698_v55 }
 0x517   :  { %1187 = vpow2.f32 %v694_v49 }
 0x51e   :  { %v1182_v58 = vpop.eup %1181 }
 0x51f   :  { %v1184_v59 = vpop.eup %1183  ;;  %v718_v60 = vsel %vm292_vm1, %v1182_v58, 0.0 }
 0x520   :  { %v1186_v61 = vpop.eup %1185  ;;  %719 = vadd.xlane.f32.xlu0 %v718_v60  ;;  %v712_v0 = vsel %vm292_vm1, %v1184_v59, 0.0 }
 0x521   :  { %v721_v23 = vsel %vm292_vm1, %v1186_v61, 0.0  ;;  %v1188_v26 = vpop.eup %1187 }
 0x522   :  { %722 = vadd.xlane.f32.xlu1 %v721_v23  ;;  %v715_v1 = vsel %vm292_vm1, %v1188_v26, 0.0 }
 0x524   :  { %713 = vadd.xlane.f32.xlu0 %v712_v0 }
 0x526   :  { %716 = vadd.xlane.f32.xlu1 %v715_v1 }
 0x537   :  { %748 = vrot.lane.b32.xlu1 %v556_v35, %s1282_s29 }
 0x53a   :  { %746 = vrot.lane.b32.xlu0 %v555_v28, %s1282_s29 }
 0x58a   :  { %v702_v32 = vpop.xlane.xlu0 %701 }
 0x58b   :  { %1189 = vrcp.f32 %v702_v32 }
 0x58c   :  { %v705_v2 = vpop.xlane.xlu1 %704 }
 0x58d   :  { %1191 = vrcp.f32 %v705_v2 }
 0x590   :  { %v711_v9 = vpop.xlane.xlu1 %710  ;;  %v708_v11 = vpop.xlane.xlu0 %707 }
 0x591   :  { %1193 = vrcp.f32 %v711_v9 }
 0x592   :  { %1195 = vrcp.f32 %v708_v11 }
 0x595   :  { %v1190_v42 = vpop.eup %1189 }
 0x596   :  { %v732_v4 = vmul.f32 %v1190_v42, %v1174_v38  ;;  %v1147_v38 = vld [vmem:[%s1720_s2 + $0x30] sm:$0xff]  }
 0x597   :  { %v1192_v44 = vpop.eup %1191  ;;  %1078 = vmatprep.subr.bf16.mxu0 %v1147_v38 }
 0x598   :  { %v733_v36 = vmul.f32 %v1192_v44, %v1176_v62  ;;  %1079 = vmatpush3.bf16.msra.mxu0 %v1147_v38 }
 0x59a   :  { %v740_v6 = vpack.c.bf16 %v733_v36, %v732_v4 }
 0x59b   :  { %v1194_v27 = vpop.eup %1193 }
 0x59c   :  { %1058 = vmatprep.mubr.msk.bf16.mxu1 %vm292_vm1, %v740_v6  ;;  %v1196_v28 = vpop.eup %1195  ;;  %v735_v15 = vmul.f32 %v1194_v27, %v1647_v45  ;;  %v1148_v45 = vld [vmem:[%s1720_s2 + $0x38] sm:$0xff]   ;;  %s1285_s2 = smov [#allocation7]  }
 0x59d   :  { %v734_v30 = vmul.f32 %v1196_v28, %v1649_v46  ;;  %1080 = vmatprep.subr.bf16.mxu0 %v1148_v45 }
 0x59e   :  { %1081 = vmatpush3.bf16.msra.mxu0 %v1148_v45 }
 0x59f   :  { %v741_v5 = vpack.c.bf16 %v735_v15, %v734_v30 }
 0x5ad   :  { %v720_v31 = vpop.xlane.xlu0 %719 }
 0x5af   :  { %v723_v34 = vpop.xlane.xlu1 %722 }
 0x5b1   :  { %v714_v35 = vpop.xlane.xlu0 %713 }
 0x5b2   :  { %1197 = vrcp.f32 %v714_v35 }
 0x5b3   :  { %1199 = vrcp.f32 %v723_v34  ;;  %v717_v24 = vpop.xlane.xlu1 %716 }
 0x5b4   :  { %1201 = vrcp.f32 %v717_v24 }
 0x5b5   :  { %1203 = vrcp.f32 %v720_v31  ;;  %v747_v12 = vpop.permute.xlu0 %746 }
 0x5b6   :  { %1054 = vmatprep.subr.bf16.mxu1 %v747_v12 }
 0x5b7   :  { %v749_v13 = vpop.permute.xlu1 %748  ;;  %1055 = vmatpush3.bf16.msra.mxu1 %v747_v12 }
 0x5b8   :  { %1056 = vmatprep.subr.bf16.mxu1 %v749_v13 }
 0x5bb   :  { %1057 = vmatpush3.bf16.msra.mxu1 %v749_v13 }
 0x5bc   :  { %v1198_v16 = vpop.eup %1197 }
 0x5bd   :  { %v1200_v33 = vpop.eup %1199  ;;  %v736_v37 = vmul.f32 %v1198_v16, %v1184_v59 }
 0x5be   :  { %v1202_v54 = vpop.eup %1201  ;;  %1059 = vmatmul.mubr.msk.bf16.vlgmr.msra.gmra.mrb[8].mxu1 %vm292_vm1, %v741_v5  ;;  %v739_v19 = vmul.f32 %v1200_v33, %v1186_v61 }
 0x5bf   :  { %v1204_v17 = vpop.eup %1203  ;;  %v737_v18 = vmul.f32 %v1202_v54, %v1188_v26 }
 0x5c0   :  { %v738_v21 = vmul.f32 %v1204_v17, %v1182_v58 }
 0x5c1   :  { %v742_v20 = vpack.c.bf16 %v737_v18, %v736_v37 }
 0x5c2   :  { %v743_v22 = vpack.c.bf16 %v739_v19, %v738_v21 }
 0x5c3   :  { %1062 = vmatprep.mubr.msk.bf16.mxu1 %vm292_vm1, %v742_v20 }
 0x5c6   :  { %1063 = vmatmul.mubr.msk.bf16.gmra.mrb[12].mxu1 %vm292_vm1, %v743_v22 }
 0x691   :  { %v1060_v43 = vpop.f32.mrb[8].mxu1 }
 0x692   :  { %v798_v62 = vpop.f32.mrb[9].mxu1 }
 0x693   :  { %v1061_v63 = vpop.f32.mrb[10].mxu1 }
 0x694   :  { %v801_v46 = vpop.f32.mrb[11].mxu1 }
 0x699   :  { %v1064_v41 = vpop.f32.mrb[12].mxu1 }
 0x69a   :  { %v814_v47 = vpop.f32.mrb[13].mxu1 }
 0x69b   :  { %v1065_v50 = vpop.f32.mrb[14].mxu1 }
 0x69c   :  { %v1112_v56 = vpack.i.bf16 %v1065_v50, %v1064_v41  ;;  %v817_v51 = vpop.f32.mrb[15].mxu1 }
 0x69d   :  { %v1107_v48 = vpack.i.bf16 %v817_v51, %v814_v47 }
 0x69e   :  { %1113 = vrot.lane.b32.xlu0 %v1112_v56, %s1282_s29 }
 0x69f   :  { %1108 = vrot.lane.b32.xlu1 %v1107_v48, %s1282_s29  ;;  %s973_s29 = sshll.u32 %s1285_s2, 4  ;;  %s974_s29 = int_to_ptr.vmem [resolvable:$true] %s973_s29 }
 0x6a0   :  { %s1249_s18 = scalar_lea.vmem %s974_s29, 512  ;;  %p1254_p3 = scmp.lt.s32.totalorder %s974_s29, %s974_s29 }
 0x6a1   :  { %p1250_p2 = scmp.ne.s32.totalorder %s974_s29, %s1249_s18  ;;  %p1255_p4 = scmp.lt.s32.totalorder %s1249_s18, %s1249_s18 }
 0x6a3   :  { %p1256_p5 = por %p1255_p4, %p1254_p3 }
 0x6a5   :  { %p1257_p6 = pnand %p1256_p5, %p1250_p2 }
 0x710   :  { %v1114_v3 = vpop.permute.xlu0 %1113 }
 0x711   :  { %v1116_v52 = vunpack.i.h.bf16 %v1114_v3  ;;  %v1115_v53 = vunpack.i.l.bf16 %v1114_v3  ;;  %v1109_v57 = vpop.permute.xlu1 %1108 }
 0x712   :  { %v1111_v10 = vunpack.i.h.bf16 %v1109_v57  ;;  %v1110_v14 = vunpack.i.l.bf16 %v1109_v57 }
 0x713   :  { %v848_v49 = vsel %vm218_vm0, %v1061_v63, %v1116_v52  ;;  %v847_v55 = vsel %vm218_vm0, %v1060_v43, %v1115_v53 }
 0x714   :  { %v850_v58 = vpack.c.bf16 %v848_v49, %v847_v55  ;;  %v845_v59 = vsel %vm218_vm0, %v798_v62, %v1110_v14  ;;  %v846_v60 = vsel %vm218_vm0, %v801_v46, %v1111_v10 }
 0x715   :  { %v849_v61 = vpack.c.bf16 %v846_v60, %v845_v59 }
 0x717   :  { %1082 = vmatprep.mubr.bf16.mxu0 %v849_v61 }
 0x718   :  { %1083 = vmatmul.mubr.bf16.vlgmr.msra.gmra.mrb[8].mxu0 %v850_v58 }
 0x7eb   :  { %v1084_v23 = vpop.f32.mrb[8].mxu0 }
 0x7ec   :  { %966 = vst [vmem:[#allocation7 + $0x10] sm:$0xff] %v1084_v23  ;;  %v949_v26 = vpop.f32.mrb[9].mxu0 }
 0x7ed   :  { %964 = vst [vmem:[#allocation7] sm:$0xff] %v949_v26  ;;  %v1085_v0 = vpop.f32.mrb[10].mxu0 }
 0x7ee   :  { %967 = vst [vmem:[#allocation7 + $0x18] sm:$0xff] %v1085_v0  ;;  %v952_v1 = vpop.f32.mrb[11].mxu0 }
 0x7ef   :  { %965 = vst [vmem:[#allocation7 + $0x8] sm:$0xff] %v952_v1 }
 0x7f0   :  { %1260 = shalt.err (!%p1257_p6)
}
 0x7f1   :  { %s1261_s1 = scalar_lea.hbm %s1724_s6, 512 }
 0x7f2   :  { %p1262_p7 = scmp.ne.s32.totalorder %s1724_s6, %s1261_s1  ;;  %p1265_p8 = scmp.lt.u32.totalorder %s1261_s1, %s1724_s6 }
 0x7f4   :  { %p1267_p9 = pnand %p1265_p8, %p1262_p7 }
 0x7f6   :  { %1270 = shalt.err (!%p1267_p9)
}
 0x7f7   :  { %979 = dma.vmem_to_hbm [thread:$0]  %s974_s29, 512, %s1724_s6, [#allocation4], %s1278_s7, %s1278_s7, %s1279_s8  }
 0x7f8   :  { %1275 = dma.done.wait [#allocation4], 512  }
 0x7f9   :  { %1276 = vsyncadd [#allocation4], 4294966784 }
 0x7fa   :  { %983 = vsyncpa [#allocation3], 1 }
 0x7fb   :  { %984 = vsyncpa [#allocation6], 1 }
 0x7fc   :  { %985 = vsyncpa [#allocation4], 1 }

</bundles_post_ra>
